<compile_context>
chip_gen: v7x
topology: tpu7x:2x2x1
jax: 0.10.0
libtpu: 0.0.40
codegen_flags: <defaults>
</compile_context>

<pallas_src>
import jax
import jax.numpy as jnp
from jax import lax
from jax.experimental import pallas as pl
from jax.experimental.pallas import tpu as pltpu


def _leaky_relu(x, slope=0.2):
    return jnp.where(x > 0, x, slope * x)


def disc_kernel(d_ref, c_ref, w1a_ref, w1b_ref, b1_ref, w2_ref, b2_ref,
                w3_ref, b3_ref, o_ref):
    # Cast activations to bf16 in-kernel (free on the VPU) for the MXU dots;
    # accumulate in f32. Layer 1's concat is fused as a split-K matmul.
    d = d_ref[...].astype(jnp.bfloat16)
    c = c_ref[...].astype(jnp.bfloat16)

    h1 = jnp.dot(d, w1a_ref[...], preferred_element_type=jnp.float32)
    h1 = h1 + jnp.dot(c, w1b_ref[...], preferred_element_type=jnp.float32)
    h1 = _leaky_relu(h1 + b1_ref[...])

    # Layer 2: bf16 operands, f32 accumulation; bias/activation in f32.
    h2 = jnp.dot(h1.astype(jnp.bfloat16), w2_ref[...],
                 preferred_element_type=jnp.float32)
    h2 = _leaky_relu(h2 + b2_ref[...])

    # Layer 3 (128 -> 1), lane-dense: (1,128) x (TB,128)^T -> (1, TB).
    # Batch lands on the lane axis, so sigmoid + store hit full vregs.
    h3 = lax.dot_general(w3_ref[...], h2,
                         dimension_numbers=(((1,), (1,)), ((), ())),
                         preferred_element_type=jnp.float32)
    o_ref[...] = jax.nn.sigmoid(h3 + b3_ref[0]).astype(o_ref.dtype)


def _round_up(x, m):
    return (x + m - 1) // m * m


def _choose_tile(B, tile_batch):
    """Pick (TB, B_pad). Multi-tile blocks need TB % 128 == 0 (lane-dense out)."""
    if B <= 256:
        tb = _round_up(B, 16)          # single tile; only sublane padding
        return tb, tb
    tb_cap = max(128, (tile_batch // 128) * 128)
    n = max(2, -(-B // tb_cap))        # >= 2 grid steps so v7x uses both TCs
    tb = _round_up(-(-B // n), 128)
    return tb, n * tb


def conditional_discriminator(data, condition, params, *, tile_batch=4096):
    """data: (B, input_dim), condition: (B, condition_dim) -> (B, 1) float32."""
    w1a, w1b, b1, w2, b2, w3, b3 = params
    B, input_dim = data.shape
    _, condition_dim = condition.shape

    TB, B_pad = _choose_tile(B, tile_batch)
    if B_pad != B:
        # Padded rows are computed then sliced off; only triggers when B is not
        # already a multiple of the tile.
        data = jnp.pad(data, ((0, B_pad - B), (0, 0)))
        condition = jnp.pad(condition, ((0, B_pad - B), (0, 0)))

    # One-time, tiny weight casts for the MXU; biases stay f32.
    w1a_bf = w1a.astype(jnp.bfloat16)
    w1b_bf = w1b.astype(jnp.bfloat16)
    w2_bf = w2.astype(jnp.bfloat16)

    resident = lambda shape: pl.BlockSpec(shape, lambda i: (0, 0))

    out = pl.pallas_call(
        disc_kernel,
        out_shape=jax.ShapeDtypeStruct((1, B_pad), jnp.float32),
        grid=(B_pad // TB,),
        in_specs=[
            pl.BlockSpec((TB, input_dim), lambda i: (i, 0)),      # data tile (f32)
            pl.BlockSpec((TB, condition_dim), lambda i: (i, 0)),  # cond tile (f32)
            resident(w1a_bf.shape),                               # (input_dim, 256)
            resident(w1b_bf.shape),                               # (condition_dim, 256)
            resident(b1.shape),                                   # (1, 256)
            resident(w2_bf.shape),                                # (256, 128)
            resident(b2.shape),                                   # (1, 128)
            resident(w3.shape),                                   # (1, 128)
            pl.BlockSpec(memory_space=pltpu.MemorySpace.SMEM),    # b3 scalar
        ],
        out_specs=pl.BlockSpec((1, TB), lambda i: (0, i)),        # lane-dense
        compiler_params=pltpu.CompilerParams(
            dimension_semantics=("parallel",),
            vmem_limit_bytes=32 * 1024 * 1024),
    )(data, condition, w1a_bf, w1b_bf, b1, w2_bf, b2, w3, b3)

    return out[0, :B].reshape(B, 1)


def init_params(key, input_dim, condition_dim):
    """Deterministic synthetic params matching nn.Linear shapes.

    Weights are stored pre-transposed as (in, out). W1 is generated as the full
    (input_dim+condition_dim, 256) matrix and split row-wise into the `data` /
    `condition` halves, matching cat((data, condition), dim=1)."""
    def linear(k, d_in, d_out):
        kw, kb = jax.random.split(k)
        bound = 1.0 / jnp.sqrt(d_in)  # PyTorch default init bound
        w = jax.random.uniform(kw, (d_in, d_out), jnp.float32, -bound, bound)
        b = jax.random.uniform(kb, (d_out,), jnp.float32, -bound, bound)
        return w, b

    k1, k2, k3 = jax.random.split(key, 3)
    w1, b1 = linear(k1, input_dim + condition_dim, 256)
    w2, b2 = linear(k2, 256, 128)
    w3, b3 = linear(k3, 128, 1)
    w1a, w1b = w1[:input_dim], w1[input_dim:]
    return (w1a, w1b, b1.reshape(1, 256), w2, b2.reshape(1, 128),
            w3.reshape(1, 128), b3.reshape(1))


def reference_forward_f32(data, condition, params):
    """Pure-f32 reference identical to the PyTorch forward."""
    w1a, w1b, b1, w2, b2, w3, b3 = params
    x = jnp.concatenate([data, condition], axis=1)
    w1 = jnp.concatenate([w1a, w1b], axis=0)
    h = _leaky_relu(x @ w1 + b1)
    h = _leaky_relu(h @ w2 + b2)
    return jax.nn.sigmoid(h @ w3.T + b3)


def reference_forward_mixed(data, condition, params):
    """Plain-JAX reference mirroring the kernel's bf16-operand / f32-accum math."""
    w1a, w1b, b1, w2, b2, w3, b3 = params
    d = data.astype(jnp.bfloat16)
    c = condition.astype(jnp.bfloat16)
    h1 = (jnp.dot(d, w1a.astype(jnp.bfloat16), preferred_element_type=jnp.float32)
          + jnp.dot(c, w1b.astype(jnp.bfloat16), preferred_element_type=jnp.float32))
    h1 = _leaky_relu(h1 + b1)
    h2 = jnp.dot(h1.astype(jnp.bfloat16), w2.astype(jnp.bfloat16),
                 preferred_element_type=jnp.float32)
    h2 = _leaky_relu(h2 + b2)
    return jax.nn.sigmoid(h2 @ w3.T + b3)


if __name__ == "__main__":
    key = jax.random.PRNGKey(0)
    k_data, k_cond, k_param = jax.random.split(key, 3)

    batch = 8
    input_dim = 16
    condition_dim = 8

    data = jax.random.normal(k_data, (batch, input_dim), jnp.float32)
    condition = jax.random.normal(k_cond, (batch, condition_dim), jnp.float32)
    params = init_params(k_param, input_dim, condition_dim)

    out = jax.block_until_ready(conditional_discriminator(data, condition, params))
    assert out.shape == (batch, 1), out.shape

    ref_mixed = reference_forward_mixed(data, condition, params)
    ref_f32 = reference_forward_f32(data, condition, params)
    # Tight check vs the identical mixed-precision math; loose check vs the
    # pure-f32 PyTorch-equivalent forward (bf16 MXU operands => relaxed tol).
    assert jnp.allclose(out, ref_mixed, atol=5e-4, rtol=0.0), (out, ref_mixed)
    assert jnp.allclose(out, ref_f32, atol=2e-2, rtol=0.0), (out, ref_f32)

    print("KERNEL_OK")
</pallas_src>

<mosaic_0001>
module attributes {stable_mosaic.version = 11 : i64} {
  func.func @disc_kernel(%arg0: i32, %arg1: memref<16x16xf32, #tpu.memory_space<vmem>>, %arg2: memref<16x8xf32, #tpu.memory_space<vmem>>, %arg3: memref<16x256xbf16, #tpu.memory_space<vmem>>, %arg4: memref<8x256xbf16, #tpu.memory_space<vmem>>, %arg5: memref<1x256xf32, #tpu.memory_space<vmem>>, %arg6: memref<256x128xbf16, #tpu.memory_space<vmem>>, %arg7: memref<1x128xf32, #tpu.memory_space<vmem>>, %arg8: memref<1x128xf32, #tpu.memory_space<vmem>>, %arg9: memref<1xf32, #tpu.memory_space<smem>>, %arg10: memref<1x16xf32, #tpu.memory_space<vmem>>) attributes {dimension_semantics = [#tpu.dimension_semantics<parallel>], iteration_bounds = array<i64: 1>, scalar_prefetch = 0 : i64, scratch_operands = 0 : i64, tpu.core_type = #tpu.core_type<tc>, window_params = [{transform_indices = @transform_0, window_bounds = array<i64: 16, 16>}, {transform_indices = @transform_1, window_bounds = array<i64: 16, 8>}, {pipeline_mode = #tpu.pipeline_mode<synchronous>, transform_indices = @transform_2, window_bounds = array<i64: 16, 256>}, {pipeline_mode = #tpu.pipeline_mode<synchronous>, transform_indices = @transform_3, window_bounds = array<i64: 8, 256>}, {pipeline_mode = #tpu.pipeline_mode<synchronous>, transform_indices = @transform_4, window_bounds = array<i64: 1, 256>}, {pipeline_mode = #tpu.pipeline_mode<synchronous>, transform_indices = @transform_5, window_bounds = array<i64: 256, 128>}, {pipeline_mode = #tpu.pipeline_mode<synchronous>, transform_indices = @transform_6, window_bounds = array<i64: 1, 128>}, {pipeline_mode = #tpu.pipeline_mode<synchronous>, transform_indices = @transform_7, window_bounds = array<i64: 1, 128>}, {transform_indices = @transform_8, window_bounds = array<i64: 1>}, {transform_indices = @transform_9, window_bounds = array<i64: 1, 16>}]} {
    %c0 = arith.constant 0 : index
    %c0_0 = arith.constant 0 : index
    %0 = vector.load %arg1[%c0, %c0_0] : memref<16x16xf32, #tpu.memory_space<vmem>>, vector<16x16xf32>
    %1 = arith.truncf %0 : vector<16x16xf32> to vector<16x16xbf16>
    %c0_1 = arith.constant 0 : index
    %c0_2 = arith.constant 0 : index
    %2 = vector.load %arg2[%c0_1, %c0_2] : memref<16x8xf32, #tpu.memory_space<vmem>>, vector<16x8xf32>
    %3 = arith.truncf %2 : vector<16x8xf32> to vector<16x8xbf16>
    %c0_3 = arith.constant 0 : index
    %c0_4 = arith.constant 0 : index
    %4 = vector.load %arg3[%c0_3, %c0_4] : memref<16x256xbf16, #tpu.memory_space<vmem>>, vector<16x256xbf16>
    %cst = arith.constant dense<0.000000e+00> : vector<16x256xf32>
    %5 = tpu.matmul %1, %4, %cst {dimension_numbers = #tpu.dot_dimension_numbers<[1], [0], [0], [1], [0, 0, 1, 1], [], []>} : vector<16x16xbf16>, vector<16x256xbf16>, vector<16x256xf32> -> vector<16x256xf32>
    %c0_5 = arith.constant 0 : index
    %c0_6 = arith.constant 0 : index
    %6 = vector.load %arg4[%c0_5, %c0_6] : memref<8x256xbf16, #tpu.memory_space<vmem>>, vector<8x256xbf16>
    %cst_7 = arith.constant dense<0.000000e+00> : vector<16x256xf32>
    %7 = tpu.matmul %3, %6, %cst_7 {dimension_numbers = #tpu.dot_dimension_numbers<[1], [0], [0], [1], [0, 0, 1, 1], [], []>} : vector<16x8xbf16>, vector<8x256xbf16>, vector<16x256xf32> -> vector<16x256xf32>
    %8 = arith.addf %5, %7 : vector<16x256xf32>
    %c0_8 = arith.constant 0 : index
    %c0_9 = arith.constant 0 : index
    %9 = vector.load %arg5[%c0_8, %c0_9] : memref<1x256xf32, #tpu.memory_space<vmem>>, vector<1x256xf32>
    %10 = vector.broadcast %9 : vector<1x256xf32> to vector<16x256xf32>
    %11 = arith.addf %8, %10 : vector<16x256xf32>
    %cst_10 = arith.constant 0.000000e+00 : f32
    %12 = vector.broadcast %cst_10 : f32 to vector<16x256xf32>
    %13 = arith.cmpf ogt, %11, %12 : vector<16x256xf32>
    %cst_11 = arith.constant 2.000000e-01 : f32
    %14 = vector.broadcast %cst_11 : f32 to vector<16x256xf32>
    %15 = arith.mulf %14, %11 : vector<16x256xf32>
    %16 = arith.select %13, %11, %15 : vector<16x256xi1>, vector<16x256xf32>
    %17 = arith.truncf %16 : vector<16x256xf32> to vector<16x256xbf16>
    %c0_12 = arith.constant 0 : index
    %c0_13 = arith.constant 0 : index
    %18 = vector.load %arg6[%c0_12, %c0_13] : memref<256x128xbf16, #tpu.memory_space<vmem>>, vector<256x128xbf16>
    %cst_14 = arith.constant dense<0.000000e+00> : vector<16x128xf32>
    %19 = tpu.matmul %17, %18, %cst_14 {dimension_numbers = #tpu.dot_dimension_numbers<[1], [0], [0], [1], [0, 0, 1, 1], [], []>} : vector<16x256xbf16>, vector<256x128xbf16>, vector<16x128xf32> -> vector<16x128xf32>
    %c0_15 = arith.constant 0 : index
    %c0_16 = arith.constant 0 : index
    %20 = vector.load %arg7[%c0_15, %c0_16] : memref<1x128xf32, #tpu.memory_space<vmem>>, vector<1x128xf32>
    %21 = vector.broadcast %20 : vector<1x128xf32> to vector<16x128xf32>
    %22 = arith.addf %19, %21 : vector<16x128xf32>
    %cst_17 = arith.constant 0.000000e+00 : f32
    %23 = vector.broadcast %cst_17 : f32 to vector<16x128xf32>
    %24 = arith.cmpf ogt, %22, %23 : vector<16x128xf32>
    %cst_18 = arith.constant 2.000000e-01 : f32
    %25 = vector.broadcast %cst_18 : f32 to vector<16x128xf32>
    %26 = arith.mulf %25, %22 : vector<16x128xf32>
    %27 = arith.select %24, %22, %26 : vector<16x128xi1>, vector<16x128xf32>
    %c0_19 = arith.constant 0 : index
    %c0_20 = arith.constant 0 : index
    %28 = vector.load %arg8[%c0_19, %c0_20] : memref<1x128xf32, #tpu.memory_space<vmem>>, vector<1x128xf32>
    %cst_21 = arith.constant dense<0.000000e+00> : vector<1x16xf32>
    %29 = tpu.matmul %28, %27, %cst_21 {dimension_numbers = #tpu.dot_dimension_numbers<[1], [1], [0], [0], [0, 0, 1, 0], [], []>} : vector<1x128xf32>, vector<16x128xf32>, vector<1x16xf32> -> vector<1x16xf32>
    %c0_22 = arith.constant 0 : index
    %30 = memref.load %arg9[%c0_22] : memref<1xf32, #tpu.memory_space<smem>>
    %31 = vector.broadcast %30 : f32 to vector<1x16xf32>
    %32 = arith.addf %29, %31 : vector<1x16xf32>
    %33 = arith.negf %32 : vector<1x16xf32>
    %34 = math.exp %33 : vector<1x16xf32>
    %cst_23 = arith.constant 1.000000e+00 : f32
    %35 = vector.broadcast %cst_23 : f32 to vector<1x16xf32>
    %36 = arith.addf %35, %34 : vector<1x16xf32>
    %37 = arith.divf %35, %36 : vector<1x16xf32>
    %c0_24 = arith.constant 0 : index
    %c0_25 = arith.constant 0 : index
    %38 = vector.load %arg10[%c0_24, %c0_25] : memref<1x16xf32, #tpu.memory_space<vmem>>, vector<1x16xf32>
    tpu.vector_store %arg10[%c0_24, %c0_25], %37 {strides = array<i32>} : memref<1x16xf32, #tpu.memory_space<vmem>>, vector<1x16xf32>,
    return
  }
  func.func @transform_0(%arg0: i32) -> (i32, i32) {
    %c0_i32 = arith.constant 0 : i32
    %c0_i32_0 = arith.constant 0 : i32
    return %arg0, %c0_i32 : i32, i32
  }
  func.func @transform_1(%arg0: i32) -> (i32, i32) {
    %c0_i32 = arith.constant 0 : i32
    %c0_i32_0 = arith.constant 0 : i32
    return %arg0, %c0_i32 : i32, i32
  }
  func.func @transform_2(%arg0: i32) -> (i32, i32) {
    %c0_i32 = arith.constant 0 : i32
    %c0_i32_0 = arith.constant 0 : i32
    %c0_i32_1 = arith.constant 0 : i32
    return %c0_i32, %c0_i32_0 : i32, i32
  }
  func.func @transform_3(%arg0: i32) -> (i32, i32) {
    %c0_i32 = arith.constant 0 : i32
    %c0_i32_0 = arith.constant 0 : i32
    %c0_i32_1 = arith.constant 0 : i32
    return %c0_i32, %c0_i32_0 : i32, i32
  }
  func.func @transform_4(%arg0: i32) -> (i32, i32) {
    %c0_i32 = arith.constant 0 : i32
    %c0_i32_0 = arith.constant 0 : i32
    %c0_i32_1 = arith.constant 0 : i32
    return %c0_i32, %c0_i32_0 : i32, i32
  }
  func.func @transform_5(%arg0: i32) -> (i32, i32) {
    %c0_i32 = arith.constant 0 : i32
    %c0_i32_0 = arith.constant 0 : i32
    %c0_i32_1 = arith.constant 0 : i32
    return %c0_i32, %c0_i32_0 : i32, i32
  }
  func.func @transform_6(%arg0: i32) -> (i32, i32) {
    %c0_i32 = arith.constant 0 : i32
    %c0_i32_0 = arith.constant 0 : i32
    %c0_i32_1 = arith.constant 0 : i32
    return %c0_i32, %c0_i32_0 : i32, i32
  }
  func.func @transform_7(%arg0: i32) -> (i32, i32) {
    %c0_i32 = arith.constant 0 : i32
    %c0_i32_0 = arith.constant 0 : i32
    %c0_i32_1 = arith.constant 0 : i32
    return %c0_i32, %c0_i32_0 : i32, i32
  }
  func.func @transform_8(%arg0: i32) -> i32 {
    %c0_i32 = arith.constant 0 : i32
    %c0_i32_0 = arith.constant 0 : i32
    return %c0_i32 : i32
  }
  func.func @transform_9(%arg0: i32) -> (i32, i32) {
    %c0_i32 = arith.constant 0 : i32
    %c0_i32_0 = arith.constant 0 : i32
    return %c0_i32, %arg0 : i32, i32
  }
}

</mosaic_0001>

<bundles_post_ra>
// kernel: tpu_custom_call.1
= control target key start
LH: loop header
LB: loop body
LE: loop exit
PB: predicated region body
PF: predicated region fallthrough
CT: control target
= control target key end

     0   :  { %15 = vsyncpa [#allocation4], 0  ;;  %s797_s0 = inlined_call_operand.vmem [shape: f32[16,16], index: 0, kind: input, shape index: {}]   ;;  %s798_s1 = inlined_call_operand.vmem [shape: f32[16,8], index: 1, kind: input, shape index: {}]   ;;  %s799_s2 = inlined_call_operand.vmem [shape: bf16[16,256], index: 2, kind: input, shape index: {}]   ;;  %s800_s3 = inlined_call_operand.hbm [shape: bf16[8,256], index: 3, kind: input, shape index: {}]   ;;  %s801_s4 = inlined_call_operand.vmem [shape: f32[1,256], index: 4, kind: input, shape index: {}]   ;;  %s802_s5 = inlined_call_operand.hbm [shape: bf16[256,128], index: 5, kind: input, shape index: {}]   ;;  %s803_s6 = inlined_call_operand.vmem [shape: f32[1,128], index: 6, kind: input, shape index: {}]   ;;  %s804_s7 = inlined_call_operand.vmem [shape: f32[1,128], index: 7, kind: input, shape index: {}]   ;;  %s805_s8 = inlined_call_operand.<no memory space> [shape: f32[1], index: 8, kind: input, shape index: {}]   ;;  %s806_s9 = inlined_call_operand.hbm [shape: f32[1,16], index: 9, kind: output, shape index: {}]  }
   0x1   :  { %16 = vsyncpa [#allocation7], 0 }
   0x2   :  { %17 = vsyncpa [#allocation5], 0  ;;  %s665_s30 = smov [#allocation3]   ;;  %s666_s11 = smov [#allocation6]  }
   0x3   :  { %s30_s10 = sshll.u32 %s665_s30, 4  ;;  %s41_s12 = sshll.u32 %s666_s11, 4  ;;  %s31_s10 = int_to_ptr.vmem [resolvable:$true] %s30_s10  ;;  %s724_s12 = int_to_ptr.vmem [resolvable:$true] %s41_s12 }
   0x4   :  { %s593_s15 = scalar_lea.hbm %s800_s3, 128 }
   0x5   :  { %p594_p0 = scmp.ne.s32.totalorder %s800_s3, %s593_s15  ;;  %p597_p1 = scmp.lt.u32.totalorder %s593_s15, %s800_s3 }
   0x7   :  { %p599_p2 = pnand %p597_p1, %p594_p0 }
   0x9   :  { %602 = shalt.err (!%p599_p2)
}
   0xa   :  { %s603_s20 = scalar_lea.vmem %s31_s10, 128  ;;  %p608_p4 = scmp.lt.s32.totalorder %s31_s10, %s31_s10 }
   0xb   :  { %p604_p3 = scmp.ne.s32.totalorder %s31_s10, %s603_s20  ;;  %p609_p5 = scmp.lt.s32.totalorder %s603_s20, %s603_s20 }
   0xd   :  { %p610_p6 = por %p609_p5, %p608_p4 }
   0xf   :  { %p611_p7 = pnand %p610_p6, %p604_p3 }
  0x11   :  { %614 = shalt.err (!%p611_p7)
}
  0x12   :  { %33 = dma.hbm_to_vmem [thread:$0]  %s800_s3, 128, %s31_s10, [#allocation4]  }
  0x13   :  { %s615_s25 = scalar_lea.hbm %s802_s5, 2048 }
  0x14   :  { %p616_p8 = scmp.ne.s32.totalorder %s802_s5, %s615_s25  ;;  %p619_p9 = scmp.lt.u32.totalorder %s615_s25, %s802_s5 }
  0x16   :  { %p621_p10 = pnand %p619_p9, %p616_p8 }
  0x18   :  { %624 = shalt.err (!%p621_p10)
}
  0x19   :  { %s625_s30 = scalar_lea.vmem %s724_s12, 2048  ;;  %p630_p12 = scmp.lt.s32.totalorder %s724_s12, %s724_s12 }
  0x1a   :  { %p626_p11 = scmp.ne.s32.totalorder %s724_s12, %s625_s30  ;;  %p631_p13 = scmp.lt.s32.totalorder %s625_s30, %s625_s30 }
  0x1c   :  { %p632_p0 = por %p631_p13, %p630_p12 }
  0x1e   :  { %p633_p1 = pnand %p632_p0, %p626_p11 }
  0x20   :  { %636 = shalt.err (!%p633_p1)
}
  0x21   :  { %s667_s3 = smov 64   ;;  %s668_s10 = smov 4  }
  0x22   :  { %47 = dma.hbm_to_vmem [thread:$0]  %s802_s5, 2048, %s724_s12, [#allocation7], %s667_s3, %s667_s3, %s668_s10  }
  0x23   :  { %659 = dma.done.wait [#allocation4], 128  }
  0x24   :  { %660 = vsyncadd [#allocation4], 4294967168 }
  0x25   :  { %661 = dma.done.wait [#allocation7], 2048  }
  0x26   :  { %662 = vsyncadd [#allocation7], 4294965248  ;;  %v669_v0 = vmov 0   ;;  %v69_v1 = vld [vmem:[#allocation3] sm:$0xff]  ;;  %vm79_vm0 = vcmask 1043456   ;;  %v65_v3 = vld [vmem:[%s798_s1 + $0x8] sm:$0xff]  ;;  %v188_v29 = vlaneseq }
  0x27   :  { %118 = vmatprep.mubr.bf16.mxu0 %v669_v0  ;;  %v64_v2 = vld [vmem:[%s798_s1] sm:$0xff]  ;;  %v496_v4 = vcombine.high %v69_v1, %v69_v1  ;;  %v495_v5 = vcombine.low %v69_v1, %v69_v1  ;;  %v573_v10 = vld [vmem:[#allocation6 + $0x40] sm:$0xff]   ;;  %vm75_vm1 = vcmask 64512   ;;  %v575_v12 = vld [vmem:[#allocation6 + $0x48] sm:$0xff]   ;;  %vm139_vm2 = vcmask 130048   ;;  %s673_s27 = smov [#allocation8]  }
  0x28   :  { %v570_v6 = vld [vmem:[%s799_s2] ss:$8 sps:$4 sm:$0xff]   ;;  %v572_v7 = vld [vmem:[%s799_s2 + $0x4] ss:$8 sps:$4 sm:$0xff]   ;;  %v66_v9 = vpack.c.bf16 %v65_v3, %v64_v2  ;;  %520 = vmatprep.subr.bf16.mxu1 %v573_v10  ;;  %v576_v13 = vld [vmem:[#allocation6 + $0x8] sm:$0xff]   ;;  %v189_v30 = vshrl.u32 %v188_v29, 7 }
  0x29   :  { %497 = vmatprep.subr.msk.bf16.mxu0 %vm79_vm0, %v496_v4  ;;  %v81_v8 = vsel %vm79_vm0, %v495_v5, 0  ;;  %v574_v11 = vld [vmem:[#allocation6] sm:$0xff]   ;;  %v577_v14 = vld [vmem:[#allocation6 + $0x50] sm:$0xff]   ;;  %v61_v15 = vld [vmem:[%s797_s0] sm:$0xff]  ;;  %v670_v54 = vmov 0.0|0.0   ;;  %vm671_vm7 = vmmov 0  }
  0x2a   :  { %87 = vmatpush1.bf16.msra.mxu0 %v81_v8  ;;  %521 = vmatpush3.bf16.msra.mxu1 %v574_v11  ;;  %v62_v16 = vld [vmem:[%s797_s0 + $0x8] sm:$0xff]  ;;  %v578_v17 = vld [vmem:[#allocation6 + $0x10] sm:$0xff]   ;;  %v579_v18 = vld [vmem:[#allocation6 + $0x58] sm:$0xff]   ;;  %v190_v31 = vsub.s32 0, %v189_v30  ;;  %v194_v33 = vsub.s32 1, %v189_v30  ;;  %v672_v55 = vmov 0.0  }
  0x2b   :  { %143 = vmatprep.subr.bf16.mxu0 %v572_v7  ;;  %522 = vmatprep.subr.bf16.mxu1 %v575_v12  ;;  %v580_v19 = vld [vmem:[#allocation6 + $0x18] sm:$0xff]   ;;  %v581_v20 = vld [vmem:[#allocation6 + $0x60] sm:$0xff]   ;;  %v63_v21 = vpack.c.bf16 %v62_v16, %v61_v15  ;;  %v583_v23 = vld [vmem:[#allocation6 + $0x68] sm:$0xff]   ;;  %v400_v7 = vstv %s805_s8  ;;  %s485_s28 = sshll.u32 %s673_s27, 4  ;;  %vm477_vm10 = vcmask 122880   ;;  %s486_s28 = int_to_ptr.vmem [resolvable:$true] %s485_s28 }
  0x2c   :  { %v582_v22 = vld [vmem:[#allocation6 + $0x20] sm:$0xff]   ;;  %v584_v24 = vld [vmem:[#allocation6 + $0x28] sm:$0xff]   ;;  %v585_v25 = vld [vmem:[#allocation6 + $0x70] sm:$0xff]   ;;  %s641_s29 = scalar_lea.vmem %s486_s28, 32  ;;  %p642_p3 = scmp.lt.s32.totalorder %s486_s28, %s486_s28 }
  0x2d   :  { %498 = vmatmul.mubr.msk.bf16.vlgmr.msra.gmra.mrb[0].mxu0 %vm75_vm1, %v66_v9  ;;  %v586_v26 = vld [vmem:[#allocation6 + $0x30] sm:$0xff]   ;;  %v587_v27 = vld [vmem:[#allocation6 + $0x78] sm:$0xff]  }
  0x2e   :  { %144 = vmatpush1.bf16.msra.mxu0 %v570_v6  ;;  %175 = vmatprep.mubr.bf16.mxu0 %v669_v0  ;;  %v588_v28 = vld [vmem:[#allocation6 + $0x38] sm:$0xff]  }
  0x2f   :  { %523 = vmatpush3.bf16.msra.mxu1 %v576_v13  ;;  %v186_v32 = vld [vmem:[%s801_s4] sm:$0x3]  ;;  %552 = vmatprep.subr.bf16.mxu0 %v670_v54 }
  0x30   :  { %524 = vmatprep.subr.bf16.mxu1 %v577_v14  ;;  %v191_v34 = vrot.slane %v186_v32, %v190_v31  ;;  %v195_v35 = vrot.slane %v186_v32, %v194_v33  ;;  %v502_v57 = vld [vmem:[%s803_s6] ss:$0 sm:$0xff] }
  0x31   :  { %v398_v6 = vld [vmem:[%s804_s7] sm:$0x1]  ;;  %s637_s7 = scalar_lea.vmem %s486_s28, 16 }
  0x32   :  { %p638_p2 = scmp.ne.s32.totalorder %s486_s28, %s637_s7  ;;  %p643_p4 = scmp.lt.s32.totalorder %s641_s29, %s637_s7 }
  0x33   :  { %525 = vmatpush3.bf16.msra.mxu1 %v578_v17 }
  0x34   :  { %526 = vmatprep.subr.bf16.mxu1 %v579_v18  ;;  %p644_p5 = por %p643_p4, %p642_p3 }
  0x36   :  { %p645_p6 = pnand %p644_p5, %p638_p2 }
  0x37   :  { %527 = vmatpush3.bf16.msra.mxu1 %v580_v19 }
  0x38   :  { %528 = vmatprep.subr.bf16.mxu1 %v581_v20 }
  0x39   :  { %501 = vmatmul.mubr.msk.bf16.vlgmr.msra.gmra.mrb[0].mxu0 %vm139_vm2, %v63_v21 }
  0x3a   :  { %549 = vmatprep.mubr.msk.f32.mxu0 %vm671_vm7, %v672_v55 }
  0x3b   :  { %529 = vmatpush3.bf16.msra.mxu1 %v582_v22 }
  0x3c   :  { %530 = vmatprep.subr.bf16.mxu1 %v583_v23 }
  0x3f   :  { %531 = vmatpush3.bf16.msra.mxu1 %v584_v24 }
  0x40   :  { %532 = vmatprep.subr.bf16.mxu1 %v585_v25 }
  0x43   :  { %533 = vmatpush3.bf16.msra.mxu1 %v586_v26 }
  0x44   :  { %534 = vmatprep.subr.bf16.mxu1 %v587_v27 }
  0x47   :  { %535 = vmatpush3.bf16.msra.mxu1 %v588_v28 }
 0x10c   :  { %v177_v36 = vpop.f32.mrb[0].mxu0 }
 0x10d   :  { %v198_v37 = vadd.f32 %v191_v34, %v177_v36  ;;  %v179_v38 = vpop.f32.mrb[1].mxu0 }
 0x10e   :  { %v199_v39 = vadd.f32 %v195_v35, %v179_v38  ;;  %v181_v40 = vpop.f32.mrb[2].mxu0 }
 0x10f   :  { %v206_v41 = vmul.f32 0.2, %v198_v37  ;;  %v200_v42 = vadd.f32 %v191_v34, %v181_v40  ;;  %v183_v43 = vpop.f32.mrb[3].mxu0  ;;  %vm202_vm3 = vcmp.gt.f32.partialorder %v198_v37, 0.0 }
 0x110   :  { %v207_v44 = vmul.f32 0.2, %v199_v39  ;;  %v201_v45 = vadd.f32 %v195_v35, %v183_v43  ;;  %vm203_vm5 = vcmp.gt.f32.partialorder %v199_v39, 0.0 }
 0x111   :  { %vm204_vm4 = vcmp.gt.f32.partialorder %v200_v42, 0.0  ;;  %v208_v46 = vmul.f32 0.2, %v200_v42  ;;  %v210_v48 = vsel %vm202_vm3, %v198_v37, %v206_v41 }
 0x112   :  { %v209_v47 = vmul.f32 0.2, %v201_v45  ;;  %vm205_vm6 = vcmp.gt.f32.partialorder %v201_v45, 0.0  ;;  %v211_v50 = vsel %vm203_vm5, %v199_v39, %v207_v44 }
 0x113   :  { %v212_v49 = vsel %vm204_vm4, %v200_v42, %v208_v46 }
 0x114   :  { %v213_v51 = vsel %vm205_vm6, %v201_v45, %v209_v47  ;;  %v214_v52 = vpack.c.bf16 %v212_v49, %v210_v48 }
 0x115   :  { %v215_v53 = vpack.c.bf16 %v213_v51, %v211_v50 }
 0x117   :  { %383 = vmatprep.mubr.bf16.mxu1 %v215_v53 }
 0x118   :  { %384 = vmatmul.mubr.bf16.vlgmr.msra.gmra.mrb[0].mxu1 %v214_v52 }
 0x1eb   :  { %v536_v56 = vpop.f32.mrb[0].mxu1 }
 0x1ec   :  { %v537_v58 = vpop.f32.mrb[1].mxu1 }
 0x1ed   :  { %v538_v59 = vadd.f32 %v537_v58, %v536_v56  ;;  %v539_v60 = vpop.f32.mrb[2].mxu1 }
 0x1ee   :  { %v540_v61 = vpop.f32.mrb[3].mxu1 }
 0x1ef   :  { %v386_v62 = vadd.f32 %v538_v59, %v502_v57  ;;  %v541_v63 = vadd.f32 %v540_v61, %v539_v60 }
 0x1f1   :  { %v394_v0 = vmul.f32 0.2, %v386_v62  ;;  %v389_v1 = vadd.f32 %v541_v63, %v502_v57  ;;  %vm392_vm8 = vcmp.gt.f32.partialorder %v386_v62, 0.0 }
 0x1f3   :  { %vm393_vm9 = vcmp.gt.f32.partialorder %v389_v1, 0.0  ;;  %v395_v2 = vmul.f32 0.2, %v389_v1  ;;  %v396_v3 = vsel %vm392_vm8, %v386_v62, %v394_v0 }
 0x1f5   :  { %v397_v4 = vsel %vm393_vm9, %v389_v1, %v395_v2 }
 0x1f6   :  { %v553_v5 = vpack.c.bf16 %v397_v4, %v396_v3 }
 0x1f8   :  { %554 = vmatpush3.bf16.xpose.msra.mxu0 %v553_v5 }
 0x1ff   :  { %550 = vmatmul.mubr.f32.vlgmr.msra.gmra.mrb[4].mxu0 %v398_v6 }
 0x2d2   :  { %v467_v8 = vpop.f32.mrb[4].mxu0 }
 0x2d3   :  { %v468_v9 = vadd.f32 %v467_v8, %v400_v7  ;;  %v551_v10 = vpop.f32.mrb[5].mxu0 }
 0x2d5   :  { %v519_v11 = vmul.f32 -1.442695, %v468_v9 }
 0x2d7   :  { %589 = vpow2.f32 %v519_v11 }
 0x2e1   :  { %v590_v12 = vpop.eup %589 }
 0x2e2   :  { %v474_v13 = vadd.f32 1.0, %v590_v12 }
 0x2e4   :  { %591 = vrcp.f32 %v474_v13 }
 0x2ee   :  { %v592_v14 = vpop.eup %591 }
 0x2ef   :  { %478 = vst.msk [vmem:[#allocation8] sm:$0x1] %vm477_vm10, %v592_v14 }
 0x2f0   :  { %648 = shalt.err (!%p645_p6)
}
 0x2f1   :  { %s649_s3 = scalar_lea.hbm %s806_s9, 16 }
 0x2f2   :  { %p650_p7 = scmp.ne.s32.totalorder %s806_s9, %s649_s3  ;;  %p653_p8 = scmp.lt.u32.totalorder %s649_s3, %s806_s9 }
 0x2f4   :  { %p655_p9 = pnand %p653_p8, %p650_p7 }
 0x2f6   :  { %658 = shalt.err (!%p655_p9)
}
 0x2f7   :  { %488 = dma.vmem_to_hbm [thread:$0]  %s486_s28, 16, %s806_s9, [#allocation5]  }
 0x2f8   :  { %663 = dma.done.wait [#allocation5], 16  }
 0x2f9   :  { %664 = vsyncadd [#allocation5], 4294967280 }
 0x2fa   :  { %492 = vsyncpa [#allocation4], 1 }
 0x2fb   :  { %493 = vsyncpa [#allocation7], 1 }
 0x2fc   :  { %494 = vsyncpa [#allocation5], 1 }

</bundles_post_ra>
